<compile_context>
chip_gen: v7x
topology: tpu7x:2x2x1
jax: 0.10.0
libtpu: 0.0.40
codegen_flags: <defaults>
</compile_context>

<pallas_src>
import jax
import jax.numpy as jnp
from jax import lax
from jax.experimental import pallas as pl
from jax.experimental.pallas import tpu as pltpu

BN_EPS = 1e-5
_MIB = 1 << 20
# Working-set budget for auto tile selection: under every generation's default
# scoped-VMEM limit and with headroom below v7x's 64 MiB physical VMEM.
_TILE_VMEM_BUDGET = 24 * _MIB


def hybrid_mlp_kernel(x_ref, w1_ref, b1w2_ref, b2_ref, o_ref, acc_ref):
    """One (batch-tile, k-tile) grid step.

    x_ref    : (tile_b, tile_k)  input tile, straight from the (B, n) array.
    w1_ref   : (hd, tile_k)      BN-folded first-layer weight slab.
    b1w2_ref : (hd, 2) f32       column 0 = folded bias b1', column 1 = w2.
    b2_ref   : (1,) in SMEM      second-layer bias (true scalar).
    o_ref    : (1, tile_b)       lane-dense output row.
    acc_ref  : (hd, tile_b) f32  K-split accumulator.
    """
    k = pl.program_id(1)

    @pl.when(k == 0)
    def _():
        acc_ref[...] = jnp.zeros_like(acc_ref)

    # Partial h^T: contract the shared n axis -> (hd, tile_b), f32 accumulate.
    acc_ref[...] += lax.dot_general(
        w1_ref[...], x_ref[...],
        dimension_numbers=(((1,), (1,)), ((), ())),
        preferred_element_type=jnp.float32)

    @pl.when(k == pl.num_programs(1) - 1)
    def _():
        bw = b1w2_ref[...]                                   # (hd, 2)
        h = jnp.maximum(acc_ref[...] + bw[:, 0:1], 0.0)      # bias + ReLU (dropout = id)
        # hd -> 1 projection: VPU multiply + sublane (XLU) reduce instead of a
        # <1%-utilized N=1 MXU matmul.
        o_ref[...] = jnp.sum(h * bw[:, 1:2], axis=0, keepdims=True) + b2_ref[0]


def _round_up(x, m):
    return -(-x // m) * m


def _pick_tiles(B, n, hd, x_bytes, w_bytes, *,
                vmem_budget=_TILE_VMEM_BUDGET, min_batch_steps=2,
                max_tile_b=2048):
    """VMEM-budget-aware tile choice.

    Accounts for double-buffered x and W1' blocks, the f32 (hd, tile_b)
    accumulator, the merged (hd, 2) bias/w2 slab and the double-buffered
    output row.  tile_b is a multiple of 128 (lane-dense output); tile_k is
    the whole n or a 128-multiple (K-split when W1' cannot stay resident).
    """
    acc_per_b = hd * 4                               # f32 accumulator column
    if n <= 1024:
        tile_k = n
    else:
        tile_k = 1024
        while tile_k > 128:
            need = (2 * hd * tile_k * w_bytes + 2 * 128 * tile_k * x_bytes
                    + 128 * acc_per_b)
            if need <= vmem_budget:
                break
            tile_k //= 2

    fixed = 2 * hd * tile_k * w_bytes + 2 * hd * 2 * 4
    per_b = 2 * tile_k * x_bytes + acc_per_b + 2 * 4
    avail = max(vmem_budget - fixed, per_b * 128)
    tile_b = max((avail // per_b) // 128 * 128, 128)
    tile_b = int(min(tile_b, max_tile_b))

    b_padded = _round_up(B, 128)
    tile_b = min(tile_b, b_padded)
    # Keep >= min_batch_steps batch grid steps so v7x's 2 TCs both get work.
    if min_batch_steps > 1:
        cap = max(_round_up(_round_up(B, min_batch_steps) // min_batch_steps, 128), 128)
        tile_b = min(tile_b, cap)
    return int(tile_b), int(tile_k)


def hybrid_forward(x, folded, *, compute_dtype=jnp.float32, tile_b=None,
                   tile_k=None, vmem_limit_bytes=None, min_batch_steps=2):
    """x: (B, n) float32 -> (B, 1) float32 (eval-mode forward)."""
    B, n = x.shape
    hd = folded["w1_eff"].shape[0]
    x_bytes = jnp.dtype(compute_dtype).itemsize
    w_bytes = x_bytes

    auto_tb, auto_tk = _pick_tiles(B, n, hd, x_bytes, w_bytes,
                                   min_batch_steps=min_batch_steps)
    tile_b = auto_tb if tile_b is None else tile_b
    tile_k = auto_tk if tile_k is None else tile_k

    Bp = _round_up(B, tile_b)
    Np = _round_up(n, tile_k)

    # Wrapper-side casts / zero-padding (padding rows/cols contribute nothing
    # and padded batch rows are sliced off the output).
    x_c = x.astype(compute_dtype)
    w1 = folded["w1_eff"].astype(compute_dtype)
    if Bp != B or Np != n:
        x_c = jnp.pad(x_c, ((0, Bp - B), (0, Np - n)))
    if Np != n:
        w1 = jnp.pad(w1, ((0, 0), (0, Np - n)))
    # Merge b1' and w2 into one replicated (hd, 2) slab (single tiny DMA).
    b1w2 = jnp.concatenate([folded["b1_eff"], folded["w2_col"]],
                           axis=1).astype(jnp.float32)

    grid = (Bp // tile_b, Np // tile_k)

    working_set = (2 * hd * tile_k * w_bytes + 2 * tile_b * tile_k * x_bytes
                   + hd * tile_b * 4 + 2 * hd * 2 * 4 + 2 * tile_b * 4)
    if vmem_limit_bytes is None:
        # Explicit limit: raises v5e's 16 MiB scoped default; <= 48 MiB keeps
        # headroom below v7x's 64 MiB physical VMEM.
        vmem_limit_bytes = int(min(max(32 * _MIB, 2 * working_set + _MIB),
                                   48 * _MIB))

    cost = pl.CostEstimate(
        flops=int(2 * B * n * hd + 4 * B * hd),
        transcendentals=0,
        bytes_accessed=int(B * n * x_bytes + hd * n * w_bytes
                           + (2 * hd + 1) * 4 + B * 4),
    )

    out_row = pl.pallas_call(
        hybrid_mlp_kernel,
        out_shape=jax.ShapeDtypeStruct((1, Bp), jnp.float32),
        grid_spec=pltpu.PrefetchScalarGridSpec(
            num_scalar_prefetch=0,
            grid=grid,
            in_specs=[
                pl.BlockSpec((tile_b, tile_k), lambda i, k: (i, k)),   # x tile
                pl.BlockSpec((hd, tile_k), lambda i, k: (0, k)),       # W1' slab
                pl.BlockSpec((hd, 2), lambda i, k: (0, 0)),            # [b1'|w2]
                pl.BlockSpec(memory_space=pltpu.MemorySpace.SMEM),     # b2
            ],
            out_specs=pl.BlockSpec((1, tile_b), lambda i, k: (0, i)),  # lane-dense
            scratch_shapes=[pltpu.VMEM((hd, tile_b), jnp.float32)],
        ),
        compiler_params=pltpu.CompilerParams(
            dimension_semantics=("parallel", "arbitrary"),
            vmem_limit_bytes=vmem_limit_bytes,
        ),
        cost_estimate=cost,
    )(x_c, w1, b1w2, folded["b2"].astype(jnp.float32))

    # (1, Bp) -> (B, 1): layout plumbing + drop batch padding.
    return out_row[0, :B].reshape(B, 1)


def init_params(key, n, hd_sz):
    """PyTorch-layout params: Linear weights are (out_features, in_features)."""
    k1, k2, k3, k4 = jax.random.split(key, 4)
    bound1 = 1.0 / jnp.sqrt(n)
    bound2 = 1.0 / jnp.sqrt(hd_sz)
    return {
        "w1": jax.random.uniform(k1, (hd_sz, n), jnp.float32, -bound1, bound1),
        "b1": jax.random.uniform(k2, (hd_sz,), jnp.float32, -bound1, bound1),
        "gamma": jnp.ones((hd_sz,), jnp.float32),
        "beta": jnp.zeros((hd_sz,), jnp.float32),
        "running_mean": jnp.zeros((hd_sz,), jnp.float32),
        "running_var": jnp.ones((hd_sz,), jnp.float32),
        "w2": jax.random.uniform(k3, (1, hd_sz), jnp.float32, -bound2, bound2),
        "b2": jax.random.uniform(k4, (1,), jnp.float32, -bound2, bound2),
    }


def fold_bn_params(p):
    """One-time offline transform: fold eval-mode BatchNorm1d into ffw1."""
    scale = p["gamma"] * lax.rsqrt(p["running_var"] + BN_EPS)            # (hd,)
    return {
        "w1_eff": p["w1"] * scale[:, None],                              # (hd, n)
        "b1_eff": ((p["b1"] - p["running_mean"]) * scale + p["beta"])[:, None],
        "w2_col": p["w2"].T,                                             # (hd, 1)
        "b2": p["b2"],                                                   # (1,)
    }


def reference_forward(x, p):
    """Pure-JAX mirror of the PyTorch module in eval mode (un-folded params)."""
    h = x @ p["w1"].T + p["b1"]
    h = (h - p["running_mean"]) * lax.rsqrt(p["running_var"] + BN_EPS) \
        * p["gamma"] + p["beta"]
    h = jnp.maximum(h, 0.0)
    return h @ p["w2"].T + p["b2"]


if __name__ == "__main__":
    key = jax.random.PRNGKey(0)
    kx, kp = jax.random.split(key)

    B, n, hd_sz = 256, 16, 32
    x = jax.random.normal(kx, (B, n), jnp.float32)
    params = init_params(kp, n, hd_sz)
    folded = fold_bn_params(params)
    ref = reference_forward(x, params)

    # f32 path: auto tiles -> tile_b=128 (2-step "parallel" batch grid), tile_k=n.
    out = jax.block_until_ready(hybrid_forward(x, folded))
    assert out.shape == (B, 1), out.shape
    err = jnp.max(jnp.abs(out - ref))
    assert jnp.allclose(out, ref, atol=1e-5, rtol=1e-5), f"f32 max err {err}"

    # bf16 compute path + non-128-divisible batch (exercises padding path).
    B2 = 200
    out2 = jax.block_until_ready(
        hybrid_forward(x[:B2], folded, compute_dtype=jnp.bfloat16))
    assert out2.shape == (B2, 1), out2.shape
    err2 = jnp.max(jnp.abs(out2 - ref[:B2]))
    assert jnp.allclose(out2, ref[:B2], atol=1e-1, rtol=1e-1), f"bf16 max err {err2}"

    print("KERNEL_OK")
</pallas_src>

<mosaic_0001>
module attributes {stable_mosaic.version = 11 : i64} {
  func.func @hybrid_mlp_kernel(%arg0: i32, %arg1: i32, %arg2: memref<128x16xf32, #tpu.memory_space<vmem>>, %arg3: memref<32x16xf32, #tpu.memory_space<vmem>>, %arg4: memref<32x2xf32, #tpu.memory_space<vmem>>, %arg5: memref<1xf32, #tpu.memory_space<smem>>, %arg6: memref<1x128xf32, #tpu.memory_space<vmem>>, %arg7: memref<32x128xf32, #tpu.memory_space<vmem>>) attributes {dimension_semantics = [#tpu.dimension_semantics<parallel>, #tpu.dimension_semantics<arbitrary>], iteration_bounds = array<i64: 2, 1>, scalar_prefetch = 0 : i64, scratch_operands = 1 : i64, tpu.core_type = #tpu.core_type<tc>, window_params = [{transform_indices = @transform_0, window_bounds = array<i64: 128, 16>}, {transform_indices = @transform_1, window_bounds = array<i64: 32, 16>}, {pipeline_mode = #tpu.pipeline_mode<synchronous>, transform_indices = @transform_2, window_bounds = array<i64: 32, 2>}, {transform_indices = @transform_3, window_bounds = array<i64: 1>}, {transform_indices = @transform_4, window_bounds = array<i64: 1, 128>}]} {
    %c0_i32 = arith.constant 0 : i32
    %0 = arith.cmpi eq, %arg1, %c0_i32 : i32
    %1 = arith.extui %0 : i1 to i32
    %c0_i32_0 = arith.constant 0 : i32
    %2 = arith.cmpi ne, %1, %c0_i32_0 : i32
    scf.if %2 {
      %cst_10 = arith.constant 0.000000e+00 : f32
      %12 = vector.broadcast %cst_10 : f32 to vector<32x128xf32>
      %c0_11 = arith.constant 0 : index
      %c0_12 = arith.constant 0 : index
      %13 = vector.load %arg7[%c0_11, %c0_12] : memref<32x128xf32, #tpu.memory_space<vmem>>, vector<32x128xf32>
      tpu.vector_store %arg7[%c0_11, %c0_12], %12 {strides = array<i32>} : memref<32x128xf32, #tpu.memory_space<vmem>>, vector<32x128xf32>,
    } else {
    }
    %c0 = arith.constant 0 : index
    %c0_1 = arith.constant 0 : index
    %3 = vector.load %arg7[%c0, %c0_1] : memref<32x128xf32, #tpu.memory_space<vmem>>, vector<32x128xf32>
    %c0_2 = arith.constant 0 : index
    %c0_3 = arith.constant 0 : index
    %4 = vector.load %arg3[%c0_2, %c0_3] : memref<32x16xf32, #tpu.memory_space<vmem>>, vector<32x16xf32>
    %c0_4 = arith.constant 0 : index
    %c0_5 = arith.constant 0 : index
    %5 = vector.load %arg2[%c0_4, %c0_5] : memref<128x16xf32, #tpu.memory_space<vmem>>, vector<128x16xf32>
    %cst = arith.constant dense<0.000000e+00> : vector<32x128xf32>
    %6 = tpu.matmul %4, %5, %cst {dimension_numbers = #tpu.dot_dimension_numbers<[1], [1], [0], [0], [0, 0, 1, 0], [], []>} : vector<32x16xf32>, vector<128x16xf32>, vector<32x128xf32> -> vector<32x128xf32>
    %7 = arith.addf %3, %6 : vector<32x128xf32>
    %c0_6 = arith.constant 0 : index
    %c0_7 = arith.constant 0 : index
    %8 = vector.load %arg7[%c0_6, %c0_7] : memref<32x128xf32, #tpu.memory_space<vmem>>, vector<32x128xf32>
    tpu.vector_store %arg7[%c0_6, %c0_7], %7 {strides = array<i32>} : memref<32x128xf32, #tpu.memory_space<vmem>>, vector<32x128xf32>,
    %c0_i32_8 = arith.constant 0 : i32
    %9 = arith.cmpi eq, %arg1, %c0_i32_8 : i32
    %10 = arith.extui %9 : i1 to i32
    %c0_i32_9 = arith.constant 0 : i32
    %11 = arith.cmpi ne, %10, %c0_i32_9 : i32
    scf.if %11 {
      %c0_10 = arith.constant 0 : index
      %c0_11 = arith.constant 0 : index
      %12 = vector.load %arg4[%c0_10, %c0_11] : memref<32x2xf32, #tpu.memory_space<vmem>>, vector<32x2xf32>
      %c0_12 = arith.constant 0 : index
      %c0_13 = arith.constant 0 : index
      %13 = vector.load %arg7[%c0_12, %c0_13] : memref<32x128xf32, #tpu.memory_space<vmem>>, vector<32x128xf32>
      %14 = vector.extract_strided_slice %12 {offsets = [0, 0], sizes = [32, 1], strides = [1, 1]} : vector<32x2xf32> to vector<32x1xf32>
      %15 = vector.broadcast %14 : vector<32x1xf32> to vector<32x128xf32>
      %16 = arith.addf %13, %15 : vector<32x128xf32>
      %cst_14 = arith.constant 0.000000e+00 : f32
      %17 = vector.broadcast %cst_14 : f32 to vector<32x128xf32>
      %18 = arith.maximumf %16, %17 : vector<32x128xf32>
      %19 = vector.extract_strided_slice %12 {offsets = [0, 1], sizes = [32, 1], strides = [1, 1]} : vector<32x2xf32> to vector<32x1xf32>
      %20 = vector.broadcast %19 : vector<32x1xf32> to vector<32x128xf32>
      %21 = arith.mulf %18, %20 : vector<32x128xf32>
      %cst_15 = arith.constant dense<0.000000e+00> : vector<128xf32>
      %22 = vector.multi_reduction <add>, %21, %cst_15 [0] : vector<32x128xf32> to vector<128xf32>
      %23 = vector.shape_cast %22 : vector<128xf32> to vector<1x128xf32>
      %c0_16 = arith.constant 0 : index
      %24 = memref.load %arg5[%c0_16] : memref<1xf32, #tpu.memory_space<smem>>
      %25 = vector.broadcast %24 : f32 to vector<1x128xf32>
      %26 = arith.addf %23, %25 : vector<1x128xf32>
      %c0_17 = arith.constant 0 : index
      %c0_18 = arith.constant 0 : index
      %27 = vector.load %arg6[%c0_17, %c0_18] : memref<1x128xf32, #tpu.memory_space<vmem>>, vector<1x128xf32>
      tpu.vector_store %arg6[%c0_17, %c0_18], %26 {strides = array<i32>} : memref<1x128xf32, #tpu.memory_space<vmem>>, vector<1x128xf32>,
    } else {
    }
    return
  }
  func.func @transform_0(%arg0: i32, %arg1: i32) -> (i32, i32) {
    %c0_i32 = arith.constant 0 : i32
    return %arg0, %arg1 : i32, i32
  }
  func.func @transform_1(%arg0: i32, %arg1: i32) -> (i32, i32) {
    %c0_i32 = arith.constant 0 : i32
    %c0_i32_0 = arith.constant 0 : i32
    return %c0_i32, %arg1 : i32, i32
  }
  func.func @transform_2(%arg0: i32, %arg1: i32) -> (i32, i32) {
    %c0_i32 = arith.constant 0 : i32
    %c0_i32_0 = arith.constant 0 : i32
    %c0_i32_1 = arith.constant 0 : i32
    return %c0_i32, %c0_i32_0 : i32, i32
  }
  func.func @transform_3(%arg0: i32, %arg1: i32) -> i32 {
    %c0_i32 = arith.constant 0 : i32
    %c0_i32_0 = arith.constant 0 : i32
    return %c0_i32 : i32
  }
  func.func @transform_4(%arg0: i32, %arg1: i32) -> (i32, i32) {
    %c0_i32 = arith.constant 0 : i32
    %c0_i32_0 = arith.constant 0 : i32
    return %c0_i32, %arg0 : i32, i32
  }
}

</mosaic_0001>

<bundles_post_ra>
// kernel: tpu_custom_call.1
= control target key start
LH: loop header
LB: loop body
LE: loop exit
PB: predicated region body
PF: predicated region fallthrough
CT: control target
= control target key end

     0   :  { %s1143_s0 = inlined_call_operand.vmem [shape: f32[256,16], index: 0, kind: input, shape index: {}]   ;;  %s1144_s1 = inlined_call_operand.vmem [shape: f32[32,16], index: 1, kind: input, shape index: {}]   ;;  %s1145_s2 = inlined_call_operand.vmem [shape: f32[32,2], index: 2, kind: input, shape index: {}]   ;;  %s1146_s3 = inlined_call_operand.<no memory space> [shape: f32[1], index: 3, kind: input, shape index: {}]   ;;  %s1147_s4 = inlined_call_operand.hbm [shape: f32[1,256], index: 4, kind: output, shape index: {}]  }
   0x1   :  { %9 = sst [smem:[#allocation3]] %s1146_s3 }
   0x2   :  { %10 = vsyncpa [#allocation5], 0 }
   0x3   :  { %12 = vsyncpa [#allocation5 + $0x1], 0  ;;  %s915_s17 = smov 0   ;;  %s917_s18 = smov 0  }
   0x4   :  { %s919_s19 = smov 0   ;;  %s921_s20 = smov 0  }
   0x5   :  { %s923_s21 = smov 0   ;;  %s925_s22 = smov 0  }
   0x6 LB: > { %s590_s3 = sadd.s32 4294967295, %s882_s22   ;;  %s591_s23 = sadd.s32 4294967294, %s882_s22   ;;  %s882_s22 = sphi %s925_s22, %s18_s22   ;;  %s878_s21 = sphi %s923_s21, %s1156_s21   ;;  %s874_s20 = sphi %s921_s20, %s1155_s20   ;;  %s870_s19 = sphi %s919_s19, %s1154_s19   ;;  %s866_s18 = sphi %s917_s18, %s1153_s18   ;;  %s862_s17 = sphi %s915_s17, %s1152_s17  }
   0x7   : > { %s30_s24 = sadd.s32 1, %s878_s21  ;;  %s133_s25 = sadd.s32 1, %s870_s19 }
   0x8   : > { %p32_p0 = scmp.ge.s32.totalorder %s30_s24, 2  ;;  %p143_p1 = scmp.ne.s32.totalorder %s870_s19, %s866_s18 }
   0x9   : > { %p144_p2 = scmp.eq.s32.totalorder %s590_s3, 1  ;;  %p149_p3 = scmp.ne.s32.totalorder %s866_s18, %s862_s17 }
   0xa   : > { %s1158_s24 = smov (%p32_p0, %s30_s24), 0  ;;  %p150_p5 = scmp.eq.s32.totalorder %s591_s23, 1 }
   0xb   : > { %p953_p4 = por %p144_p2, %p143_p1  ;;  %s130_s27 = ssub.s32 %s878_s21, %s1158_s24 }
   0xc   : > { %p595_p6 = scmp.ge.s32.totalorder %s882_s22, 1  ;;  %p131_p7 = scmp.eq.s32.totalorder %s130_s27, 0 }
   0xd   : > { %p960_p8 = por %p150_p5, %p149_p3  ;;  %p193_p9 = scmp.lt.s32.totalorder %s882_s22, 3 }
   0xe   : > { %s966_s29 = scalar_select %p131_p7, %s870_s19, %s133_s25  }
   0xf   : > { %p194_p10 = pnand %p595_p6, %p193_p9 }
  0x10   : > { %s968_s30 = sshll.u32 (!%p194_p10), %s874_s20, 4  ;;  %vm270_vm0 = vcmask (!%p194_p10), 130048   ;;  %v250_v0 = vld [vmem:[%s1144_s1] sm:$0xff] (!%p194_p10)  ;;  %v252_v1 = vld [vmem:[%s1144_s1 + $0x10] sm:$0xff] (!%p194_p10)  ;;  %v884_v3 = vmov (!%p194_p10), 0   ;;  %v430_v5 = vld [vmem:[%s1145_s2 + $0x18] sm:$0xff] (!%p194_p10) }
  0x11   : > { %197 = sbr.rel (%p194_p10) target bundleno = 348 (0x15c), region = 36  ;;  %p226_p11 = scmp.lt.s32.totalorder (!%p194_p10), %s968_s30, 31  ;;  %673 = vmatprep.mubr.msk.f32.mxu0 (!%p194_p10), %vm270_vm0, %v250_v0  ;;  %676 = vmatprep.mubr.msk.f32.mxu1 (!%p194_p10), %vm270_vm0, %v252_v1  ;;  %v429_v2 = vld [vmem:[%s1145_s2 + $0x10] sm:$0xff] (!%p194_p10)  ;;  %v427_v4 = vld [vmem:[%s1145_s2] sm:$0xff] (!%p194_p10)  ;;  %v428_v6 = vld [vmem:[%s1145_s2 + $0x8] sm:$0xff] (!%p194_p10)  ;;  %v885_v16 = vmov (!%p194_p10), 1  }
  0x12   : > { %801 = vset.pattern.permute.xlu1 (!%p194_p10), %v884_v3  ;;  %800 = vset.pattern.permute.xlu0 (!%p194_p10), %v884_v3  ;;  %vm999_vm1 = vmpackc.low (!%p194_p10), %vm270_vm0, %vm270_vm0  ;;  %v251_v33 = vld [vmem:[%s1144_s1 + $0x8] sm:$0xff] (!%p194_p10)  ;;  %v253_v34 = vld [vmem:[%s1144_s1 + $0x18] sm:$0xff] (!%p194_p10)  ;;  %s492_s9 = sld [smem:[#allocation3]] (!%p194_p10)  ;;  %s223_s10 = sand.u32 (!%p194_p10), 1, %s866_s18  }
  0x13   : > { %447 = vperm.xlu1 (!%p194_p10), %801, %v429_v2   ;;  %437 = vperm.xlu0 (!%p194_p10), %800, %v427_v4   ;;  %s224_s11 = scalar_lea.vmem (!%p194_p10), [#allocation4], %s223_s10  ;;  %s1096_s15 = scalar_lea.hbm (!%p194_p10), %s1147_s4, %s968_s30 }
  0x14   : > { %s509_s12 = sshll.u32 (!%p194_p10), %s224_s11, 4  ;;  %s497_s16 = scalar_lea.sflag (!%p194_p10), [#allocation5], %s223_s10  ;;  %s1098_s12 = int_to_ptr.vmem [resolvable:$true] %s509_s12 }
  0x15   : > { %s804_s20 = scalar_lea.vmem (!%p194_p10), %s1098_s12, 16 }
  0x16   : > { %p805_p12 = scmp.ne.s32.totalorder (!%p194_p10), %s1098_s12, %s804_s20 }
  0x17   : > { %452 = vperm.xlu1 (!%p194_p10), %801, %v430_v5   ;;  %442 = vperm.xlu0 (!%p194_p10), %800, %v428_v6  }
  0x18   : > { %s227_s13 = scalar_select %p226_p11, %s968_s30, 31  ;;  %v493_v3 = vstv %s492_s9 }
  0x19   : > { %p806_p13 = pnand %p805_p12, %p953_p4 }
  0x1a   : > { %s597_s3 = sshll.u32 %s227_s13, 3 }
  0x1b   : > { %s995_s27 = scalar_lea.vmem %s1143_s0, %s597_s3  ;;  %803 = vset.pattern.permute.xlu1 %v885_v16  ;;  %802 = vset.pattern.permute.xlu0 %v885_v16  ;;  %p807_p0 = pneg %p806_p13 }
  0x1c   : > { %v254_v8 = vld [vmem:[%s995_s27] sm:$0xff]  ;;  %v255_v9 = vld [vmem:[%s995_s27 + $0x8] sm:$0xff]  ;;  %v256_v10 = vld [vmem:[%s995_s27 + $0x10] sm:$0xff]  ;;  %468 = vperm.xlu1 %803, %v428_v6   ;;  %464 = vperm.xlu0 %802, %v427_v4   ;;  %s886_s3 = smov [#allocation4]  }
  0x1d   : > { %v679_v11 = vpack.c.bf16 %v255_v9, %v254_v8  ;;  %v257_v12 = vld [vmem:[%s995_s27 + $0x18] sm:$0xff]  ;;  %v258_v14 = vld [vmem:[%s995_s27 + $0x20] sm:$0xff]  ;;  %v259_v15 = vld [vmem:[%s995_s27 + $0x28] sm:$0xff]  ;;  %s808_s23 = sshll.u32 %s886_s3, 4  ;;  %s809_s23 = int_to_ptr.vmem [resolvable:$false] %s808_s23 }
  0x1e   : > { %v685_v13 = vpack.c.bf16 %v257_v12, %v256_v10  ;;  %v691_v17 = vpack.c.bf16 %v259_v15, %v258_v14  ;;  %v260_v18 = vld [vmem:[%s995_s27 + $0x30] sm:$0xff]  ;;  %v261_v19 = vld [vmem:[%s995_s27 + $0x38] sm:$0xff]  ;;  %v262_v21 = vld [vmem:[%s995_s27 + $0x40] sm:$0xff]  ;;  %s810_s25 = scalar_lea.vmem %s809_s23, 32  ;;  %p811_p1 = scmp.lt.s32.totalorder %s1098_s12, %s809_s23 }
  0x1f   : > { %681 = vmatprep.subr.msk.bf16.mxu0 %vm999_vm1, %v679_v11  ;;  %727 = vmatprep.subr.msk.bf16.mxu1 %vm999_vm1, %v679_v11  ;;  %v697_v20 = vpack.c.bf16 %v261_v19, %v260_v18  ;;  %v263_v22 = vld [vmem:[%s995_s27 + $0x48] sm:$0xff]  ;;  %v264_v24 = vld [vmem:[%s995_s27 + $0x50] sm:$0xff]  ;;  %v265_v25 = vld [vmem:[%s995_s27 + $0x58] sm:$0xff]  ;;  %p812_p2 = scmp.lt.s32.totalorder %s810_s25, %s804_s20 }
  0x20   : > { %684 = vmatpush3.bf16.xpose.msk.msra.mxu0 %vm999_vm1, %v679_v11  ;;  %735 = vmatpush3.bf16.xpose.msk.msra.mxu1 %vm999_vm1, %v679_v11  ;;  %v703_v23 = vpack.c.bf16 %v263_v22, %v262_v21  ;;  %v709_v26 = vpack.c.bf16 %v265_v25, %v264_v24  ;;  %v266_v27 = vld [vmem:[%s995_s27 + $0x60] sm:$0xff]  ;;  %v267_v28 = vld [vmem:[%s995_s27 + $0x68] sm:$0xff]  ;;  %v268_v30 = vld [vmem:[%s995_s27 + $0x70] sm:$0xff] }
  0x21   : > { %687 = vmatprep.subr.msk.bf16.mxu0 %vm999_vm1, %v685_v13  ;;  %728 = vmatprep.subr.msk.bf16.mxu1 %vm999_vm1, %v685_v13  ;;  %v715_v29 = vpack.c.bf16 %v267_v28, %v266_v27  ;;  %v269_v31 = vld [vmem:[%s995_s27 + $0x78] sm:$0xff]  ;;  %p813_p3 = por %p812_p2, %p811_p1 }
  0x22   : > { %472 = vperm.xlu1 %803, %v429_v2   ;;  %476 = vperm.xlu0 %802, %v430_v5   ;;  %v721_v32 = vpack.c.bf16 %v269_v31, %v268_v30 }
  0x23   : > { %p814_p5 = pnand %p813_p3, %p807_p0 }
  0x28   : > { %690 = vmatpush3.bf16.xpose.msk.msra.mxu0 %vm999_vm1, %v685_v13  ;;  %736 = vmatpush3.bf16.xpose.msk.msra.mxu1 %vm999_vm1, %v685_v13 }
  0x29   : > { %693 = vmatprep.subr.msk.bf16.mxu0 %vm999_vm1, %v691_v17  ;;  %729 = vmatprep.subr.msk.bf16.mxu1 %vm999_vm1, %v691_v17 }
  0x30   : > { %696 = vmatpush3.bf16.xpose.msk.msra.mxu0 %vm999_vm1, %v691_v17  ;;  %737 = vmatpush3.bf16.xpose.msk.msra.mxu1 %vm999_vm1, %v691_v17 }
  0x31   : > { %699 = vmatprep.subr.msk.bf16.mxu0 %vm999_vm1, %v697_v20  ;;  %730 = vmatprep.subr.msk.bf16.mxu1 %vm999_vm1, %v697_v20 }
  0x38   : > { %702 = vmatpush3.bf16.xpose.msk.msra.mxu0 %vm999_vm1, %v697_v20  ;;  %738 = vmatpush3.bf16.xpose.msk.msra.mxu1 %vm999_vm1, %v697_v20 }
  0x39   : > { %705 = vmatprep.subr.msk.bf16.mxu0 %vm999_vm1, %v703_v23  ;;  %731 = vmatprep.subr.msk.bf16.mxu1 %vm999_vm1, %v703_v23 }
  0x40   : > { %708 = vmatpush3.bf16.xpose.msk.msra.mxu0 %vm999_vm1, %v703_v23  ;;  %739 = vmatpush3.bf16.xpose.msk.msra.mxu1 %vm999_vm1, %v703_v23 }
  0x41   : > { %711 = vmatprep.subr.msk.bf16.mxu0 %vm999_vm1, %v709_v26  ;;  %732 = vmatprep.subr.msk.bf16.mxu1 %vm999_vm1, %v709_v26 }
  0x48   : > { %714 = vmatpush3.bf16.xpose.msk.msra.mxu0 %vm999_vm1, %v709_v26  ;;  %740 = vmatpush3.bf16.xpose.msk.msra.mxu1 %vm999_vm1, %v709_v26 }
  0x49   : > { %717 = vmatprep.subr.msk.bf16.mxu0 %vm999_vm1, %v715_v29  ;;  %733 = vmatprep.subr.msk.bf16.mxu1 %vm999_vm1, %v715_v29 }
  0x50   : > { %720 = vmatpush3.bf16.xpose.msk.msra.mxu0 %vm999_vm1, %v715_v29  ;;  %741 = vmatpush3.bf16.xpose.msk.msra.mxu1 %vm999_vm1, %v715_v29 }
  0x51   : > { %723 = vmatprep.subr.msk.bf16.mxu0 %vm999_vm1, %v721_v32  ;;  %734 = vmatprep.subr.msk.bf16.mxu1 %vm999_vm1, %v721_v32 }
  0x58   : > { %726 = vmatpush3.bf16.xpose.msk.msra.mxu0 %vm999_vm1, %v721_v32  ;;  %742 = vmatpush3.bf16.xpose.msk.msra.mxu1 %vm999_vm1, %v721_v32 }
  0x5f   : > { %674 = vmatmul.mubr.msk.f32.vlgmr.msra.gmra.mrb[0].mxu0 %vm270_vm0, %v251_v33  ;;  %677 = vmatmul.mubr.msk.f32.vlgmr.msra.gmra.mrb[0].mxu1 %vm270_vm0, %v253_v34 }
  0x92   : > { %v448_v35 = vpop.permute.xlu1 %447  ;;  %v438_v36 = vpop.permute.xlu0 %437 }
  0x96   : > { %v453_v37 = vpop.permute.xlu1 %452  ;;  %v443_v38 = vpop.permute.xlu0 %442 }
  0x9b   : > { %v469_v39 = vpop.permute.xlu1 %468  ;;  %v465_v40 = vpop.permute.xlu0 %464 }
  0xa1   : > { %v473_v55 = vpop.permute.xlu1 %472  ;;  %v477_v56 = vpop.permute.xlu0 %476 }
 0x132   : > { %v675_v41 = vpop.f32.mrb[0].mxu0  ;;  %v678_v42 = vpop.f32.mrb[0].mxu1 }
 0x133   : > { %v456_v43 = vadd.f32 %v675_v41, %v443_v38  ;;  %v397_v44 = vpop.f32.mrb[1].mxu0  ;;  %v407_v45 = vpop.f32.mrb[1].mxu1  ;;  %v458_v46 = vadd.f32 %v678_v42, %v453_v37 }
 0x134   : > { %v455_v47 = vadd.f32 %v438_v36, %v397_v44  ;;  %v457_v48 = vadd.f32 %v448_v35, %v407_v45 }
 0x135   : > { %v460_v49 = vmax.f32 %v456_v43, 0.0  ;;  %v462_v53 = vmax.f32 %v458_v46, 0.0 }
 0x136   : > { %v459_v50 = vmax.f32 %v455_v47, 0.0  ;;  %v461_v51 = vmax.f32 %v457_v48, 0.0 }
 0x137   : > { %v480_v52 = vmul.f32 %v469_v39, %v460_v49  ;;  %v482_v60 = vmul.f32 %v477_v56, %v462_v53 }
 0x138   : > { %v479_v54 = vmul.f32 %v465_v40, %v459_v50  ;;  %v481_v57 = vmul.f32 %v473_v55, %v461_v51 }
 0x13a   : > { %v483_v58 = vadd.f32 %v480_v52, %v479_v54 }
 0x13c   : > { %v484_v59 = vadd.f32 %v483_v58, %v481_v57 }
 0x13e   : > { %v485_v61 = vadd.f32 %v484_v59, %v482_v60 }
 0x140   : > { %v486_v62 = vrot.slane %v485_v61, 4 }
 0x142   : > { %v487_v63 = vadd.f32 %v486_v62, %v485_v61 }
 0x144   : > { %v488_v0 = vrot.slane %v487_v63, 2 }
 0x146   : > { %v489_v1 = vadd.f32 %v488_v0, %v487_v63 }
 0x148   : > { %v490_v2 = vrot.slane %v489_v1, 1 }
 0x14a   : > { %v491_v4 = vadd.f32 %v490_v2, %v489_v1 }
 0x14c   : > { %v494_v5 = vadd.f32 %v493_v3, %v491_v4 }
 0x14e   : > { %495 = vst [vmem:[%s224_s11] sm:$0x1] %v494_v5 }
 0x14f   : > { %817 = shalt.err (!%p814_p5)
}
 0x150   : > { %s818_s30 = scalar_lea.hbm %s1096_s15, 16  ;;  %s822_s6 = scalar_lea.hbm %s1147_s4, 32 }
 0x151   : > { %p819_p6 = scmp.ne.s32.totalorder %s1096_s15, %s818_s30  ;;  %p823_p10 = scmp.lt.u32.totalorder %s1096_s15, %s1147_s4 }
 0x152   : > { %p824_p11 = scmp.lt.u32.totalorder %s822_s6, %s818_s30  ;;  %p826_p13 = scmp.lt.u32.totalorder %s818_s30, %s1096_s15 }
 0x153   : > { %p820_p7 = pnand %p819_p6, %p953_p4 }
 0x154   : > { %p825_p12 = por %p824_p11, %p823_p10 }
 0x155   : > { %p821_p9 = pneg %p820_p7 }
 0x156   : > { %p827_p0 = por %p826_p13, %p825_p12 }
 0x158   : > { %p828_p1 = pnand %p827_p0, %p821_p9 }
 0x15a   : > { %831 = shalt.err (!%p828_p1)
}
 0x15b   : > { %743 = dma.vmem_to_hbm [thread:$0]  (%p953_p4), %s1098_s12, 16, %s1096_s15, %s497_s16  }
 0x15c PF: > { %p749_p2 = scmp.ge.s32.totalorder %s882_s22, 2  ;;  %s521_s9 = sand.u32 1, %s862_s17  }
 0x15d   : > { %s522_s10 = scalar_lea.sflag [#allocation5], %s521_s9 }
 0x15e   : > { %p746_p3 = pnand %p749_p2, %p960_p8 }
 0x160   : > { %857 = dma.done.wait (!%p746_p3), %s522_s10, 16  }
 0x161   : > { %859 = vsyncadd (!%p746_p3), %s522_s10, 4294967280  ;;  %s18_s22 = sadd.s32 1, %s882_s22   ;;  %s1152_s17 = smov %s866_s18 }
 0x162   : > { %p15_p5 = scmp.ge.s32.totalorder %s18_s22, 4   ;;  %s1153_s18 = smov %s870_s19 }
 0x163   : > { %s1154_s19 = smov %s966_s29  ;;  %s1155_s20 = smov %s878_s21 }
 0x164   : > { %s1156_s21 = smov %s1158_s24  ;;  %17 = sbr.rel (!%p15_p5) target bundleno = 6 (0x6), region = 82 }
 0x16b   :  { %526 = vsyncpa [#allocation5], 1 }
 0x16c   :  { %528 = vsyncpa [#allocation5 + $0x1], 1 }

</bundles_post_ra>
